<compile_context>
chip_gen: v5e
topology: v5e:2x2
jax: 0.10.0
libtpu: 0.0.40
codegen_flags: <defaults>
</compile_context>

<pallas_src>
import jax
import jax.numpy as jnp
from jax.experimental import pallas as pl
from jax.experimental.pallas import tpu as pltpu

BN_EPS = 1e-5
HIDDEN = 32     # logical hidden width of the module
N_CLS = 10      # logical number of classes
H_PAD = 128     # lane-dense padded hidden width
C_PAD = 128     # lane-dense padded class width
VMEM_LIMIT = 32 * 1024 * 1024  # safe on v5e / v6e / v7x


def _round_up(x, m):
    return (x + m - 1) // m * m


# ---------- pass 1: per-feature sum / sum-of-squares of a = x @ w1 ----------
def _stats_kernel(x_ref, w1_ref, sum_ref, sumsq_ref):
    @pl.when(pl.program_id(0) == 0)
    def _init():
        sum_ref[...] = jnp.zeros_like(sum_ref)
        sumsq_ref[...] = jnp.zeros_like(sumsq_ref)

    a = jnp.dot(x_ref[...], w1_ref[...], preferred_element_type=jnp.float32)
    sum_ref[...] += jnp.sum(a, axis=0, keepdims=True)
    sumsq_ref[...] += jnp.sum(a * a, axis=0, keepdims=True)


# ---------- pass 2: fused BN (scale/shift) + ReLU + Linear(32, 10) ----------
def _fwd_kernel(x_ref, w1_ref, scale_ref, shift_ref, w2_ref, b2_ref, out_ref):
    a = jnp.dot(x_ref[...], w1_ref[...], preferred_element_type=jnp.float32)
    y = jnp.maximum(a * scale_ref[...] + shift_ref[...], 0.0)
    out = jnp.dot(y.astype(w2_ref.dtype), w2_ref[...],
                  preferred_element_type=jnp.float32) + b2_ref[...]
    out_ref[...] = out.astype(out_ref.dtype)


def prepare_params(p):
    """One-time padding/casting of the module weights to kernel layout.

    Weights are stored pre-transposed as (in_features, out_features); hidden and
    class dims are zero-padded to 128 (no-op math), matmul weights cast to bf16.
    b1 is intentionally dropped: it cancels exactly through training-mode BN.
    """
    nz = p["w1"].shape[0]
    w1 = jnp.zeros((nz, H_PAD), jnp.bfloat16).at[:, :HIDDEN].set(
        p["w1"].astype(jnp.bfloat16))
    gamma = jnp.zeros((1, H_PAD), jnp.float32).at[:, :HIDDEN].set(p["gamma"])
    beta = jnp.zeros((1, H_PAD), jnp.float32).at[:, :HIDDEN].set(p["beta"])
    w2 = jnp.zeros((H_PAD, C_PAD), jnp.bfloat16).at[:HIDDEN, :N_CLS].set(
        p["w2"].astype(jnp.bfloat16))
    b2 = jnp.zeros((1, C_PAD), jnp.float32).at[:, :N_CLS].set(p["b2"])
    return dict(w1=w1, gamma=gamma, beta=beta, w2=w2, b2=b2)


def classifier_forward(x, prepared, *, block_b=256):
    """x: (B, nz) float32.  prepared: output of prepare_params."""
    B, nz = x.shape
    w1, gamma, beta, w2, b2 = (prepared[k] for k in
                               ("w1", "gamma", "beta", "w2", "b2"))

    # Batch tiling (sublane axis must be a multiple of 8).
    tb = _round_up(min(block_b, _round_up(B, 8)), 8)
    b_pad = _round_up(B, tb)
    nbt = b_pad // tb

    # bf16 x halves the dominant HBM stream; zero-pad the batch so the last
    # tile's extra rows contribute exactly 0 to the statistics.
    x_bf = x.astype(jnp.bfloat16)
    if b_pad != B:
        x_bf = jnp.pad(x_bf, ((0, b_pad - B), (0, 0)))

    def resident(shape):  # weight/bias blocks stay VMEM-resident across the grid
        return pl.BlockSpec(shape, lambda i: (0, 0))

    # ---- pass 1: batch statistics of a = x @ w1 ----
    s, ss = pl.pallas_call(
        _stats_kernel,
        out_shape=(jax.ShapeDtypeStruct((1, H_PAD), jnp.float32),
                   jax.ShapeDtypeStruct((1, H_PAD), jnp.float32)),
        grid=(nbt,),
        in_specs=[pl.BlockSpec((tb, nz), lambda i: (i, 0)),
                  resident((nz, H_PAD))],
        out_specs=(resident((1, H_PAD)), resident((1, H_PAD))),
        compiler_params=pltpu.CompilerParams(
            dimension_semantics=("arbitrary",),
            vmem_limit_bytes=VMEM_LIMIT),
        cost_estimate=pl.CostEstimate(
            flops=2 * b_pad * nz * H_PAD + 3 * b_pad * H_PAD,
            transcendentals=0,
            bytes_accessed=x_bf.size * 2 + w1.size * 2 + 2 * H_PAD * 4),
    )(x_bf, w1)

    # ---- tiny (1,128) wrapper math: fold BN into per-feature scale/shift ----
    n = float(B)
    mean_a = s / n
    var = jnp.maximum(ss / n - mean_a * mean_a, 0.0)   # single-pass, clamped
    inv_std = jax.lax.rsqrt(var + BN_EPS)
    scale = gamma * inv_std
    shift = beta - mean_a * scale                      # b1 cancels exactly

    # ---- pass 2: normalize + ReLU + second matmul (lane-dense 128-wide out) --
    out = pl.pallas_call(
        _fwd_kernel,
        out_shape=jax.ShapeDtypeStruct((b_pad, C_PAD), jnp.float32),
        grid=(nbt,),
        in_specs=[pl.BlockSpec((tb, nz), lambda i: (i, 0)),
                  resident((nz, H_PAD)),
                  resident((1, H_PAD)),
                  resident((1, H_PAD)),
                  resident((H_PAD, C_PAD)),
                  resident((1, C_PAD))],
        out_specs=pl.BlockSpec((tb, C_PAD), lambda i: (i, 0)),
        compiler_params=pltpu.CompilerParams(
            dimension_semantics=("parallel",),
            vmem_limit_bytes=VMEM_LIMIT),
        cost_estimate=pl.CostEstimate(
            flops=2 * b_pad * nz * H_PAD + 2 * b_pad * H_PAD * C_PAD
                  + 3 * b_pad * H_PAD,
            transcendentals=0,
            bytes_accessed=x_bf.size * 2 + w1.size * 2 + w2.size * 2
                           + b_pad * C_PAD * 4),
    )(x_bf, w1, scale, shift, w2, b2)

    return out[:B, :N_CLS]


def init_params(key, nz, hidden=HIDDEN, n_cls=N_CLS):
    """Deterministic synthetic init (stand-in for initialize_weights)."""
    k1, k2, k3, k4, k5, k6 = jax.random.split(key, 6)
    # Stored pre-transposed: (in_features, out_features)
    w1 = jax.random.normal(k1, (nz, hidden), jnp.float32) * 0.1
    b1 = jax.random.normal(k3, (1, hidden), jnp.float32) * 0.1
    gamma = 1.0 + 0.1 * jax.random.normal(k6, (1, hidden), jnp.float32)
    beta = jax.random.normal(k4, (1, hidden), jnp.float32) * 0.1
    w2 = jax.random.normal(k2, (hidden, n_cls), jnp.float32) * 0.1
    b2 = jax.random.normal(k5, (1, n_cls), jnp.float32) * 0.1
    return dict(w1=w1, b1=b1, gamma=gamma, beta=beta, w2=w2, b2=b2)


def reference_forward(x, p):
    """Pure-JAX f32 reference of the module (training-mode BN)."""
    h = x @ p["w1"] + p["b1"]
    mean = jnp.mean(h, axis=0, keepdims=True)
    var = jnp.mean((h - mean) ** 2, axis=0, keepdims=True)
    h = (h - mean) / jnp.sqrt(var + BN_EPS) * p["gamma"] + p["beta"]
    h = jnp.maximum(h, 0.0)
    return h @ p["w2"] + p["b2"]


if __name__ == "__main__":
    key = jax.random.PRNGKey(0)
    kx, kp = jax.random.split(key)

    # Small shapes consistent with Classifier(nz); B=50 with block_b=16
    # exercises the multi-tile grid, the two-pass BN and the padded last tile.
    B, nz = 50, 16
    x = jax.random.normal(kx, (B, nz), jnp.float32)
    params = init_params(kp, nz)
    prepared = prepare_params(params)

    out = classifier_forward(x, prepared, block_b=16)
    out = jax.block_until_ready(out)

    ref = reference_forward(x, params)
    assert out.shape == (B, N_CLS)
    max_err = float(jnp.max(jnp.abs(out - ref)))
    # bf16 matmul inputs vs an f32 reference -> modest tolerance.
    assert jnp.allclose(out, ref, atol=5e-2, rtol=5e-2), \
        f"mismatch vs reference (max|diff|={max_err})"

    print("KERNEL_OK")
</pallas_src>

<mosaic_0001>
module attributes {stable_mosaic.version = 11 : i64} {
  func.func @_stats_kernel(%arg0: i32, %arg1: memref<16x16xbf16, #tpu.memory_space<vmem>>, %arg2: memref<16x128xbf16, #tpu.memory_space<vmem>>, %arg3: memref<1x128xf32, #tpu.memory_space<vmem>>, %arg4: memref<1x128xf32, #tpu.memory_space<vmem>>) attributes {dimension_semantics = [#tpu.dimension_semantics<arbitrary>], iteration_bounds = array<i64: 4>, scalar_prefetch = 0 : i64, scratch_operands = 0 : i64, tpu.core_type = #tpu.core_type<tc>, window_params = [{transform_indices = @transform_0, window_bounds = array<i64: 16, 16>}, {pipeline_mode = #tpu.pipeline_mode<synchronous>, transform_indices = @transform_1, window_bounds = array<i64: 16, 128>}, {pipeline_mode = #tpu.pipeline_mode<synchronous>, transform_indices = @transform_2, window_bounds = array<i64: 1, 128>}, {pipeline_mode = #tpu.pipeline_mode<synchronous>, transform_indices = @transform_3, window_bounds = array<i64: 1, 128>}]} {
    %c0_i32 = arith.constant 0 : i32
    %0 = arith.cmpi eq, %arg0, %c0_i32 : i32
    %1 = arith.extui %0 : i1 to i32
    %c0_i32_0 = arith.constant 0 : i32
    %2 = arith.cmpi ne, %1, %c0_i32_0 : i32
    scf.if %2 {
      %cst_14 = arith.constant 0.000000e+00 : f32
      %17 = vector.broadcast %cst_14 : f32 to vector<1x128xf32>
      %c0_15 = arith.constant 0 : index
      %c0_16 = arith.constant 0 : index
      %18 = vector.load %arg3[%c0_15, %c0_16] : memref<1x128xf32, #tpu.memory_space<vmem>>, vector<1x128xf32>
      tpu.vector_store %arg3[%c0_15, %c0_16], %17 {strides = array<i32>} : memref<1x128xf32, #tpu.memory_space<vmem>>, vector<1x128xf32>,
      %cst_17 = arith.constant 0.000000e+00 : f32
      %19 = vector.broadcast %cst_17 : f32 to vector<1x128xf32>
      %c0_18 = arith.constant 0 : index
      %c0_19 = arith.constant 0 : index
      %20 = vector.load %arg4[%c0_18, %c0_19] : memref<1x128xf32, #tpu.memory_space<vmem>>, vector<1x128xf32>
      tpu.vector_store %arg4[%c0_18, %c0_19], %19 {strides = array<i32>} : memref<1x128xf32, #tpu.memory_space<vmem>>, vector<1x128xf32>,
    } else {
    }
    %c0 = arith.constant 0 : index
    %c0_1 = arith.constant 0 : index
    %3 = vector.load %arg1[%c0, %c0_1] : memref<16x16xbf16, #tpu.memory_space<vmem>>, vector<16x16xbf16>
    %c0_2 = arith.constant 0 : index
    %c0_3 = arith.constant 0 : index
    %4 = vector.load %arg2[%c0_2, %c0_3] : memref<16x128xbf16, #tpu.memory_space<vmem>>, vector<16x128xbf16>
    %cst = arith.constant dense<0.000000e+00> : vector<16x128xf32>
    %5 = tpu.matmul %3, %4, %cst {dimension_numbers = #tpu.dot_dimension_numbers<[1], [0], [0], [1], [0, 0, 1, 1], [], []>} : vector<16x16xbf16>, vector<16x128xbf16>, vector<16x128xf32> -> vector<16x128xf32>
    %c0_4 = arith.constant 0 : index
    %c0_5 = arith.constant 0 : index
    %6 = vector.load %arg3[%c0_4, %c0_5] : memref<1x128xf32, #tpu.memory_space<vmem>>, vector<1x128xf32>
    %cst_6 = arith.constant dense<0.000000e+00> : vector<128xf32>
    %7 = vector.multi_reduction <add>, %5, %cst_6 [0] : vector<16x128xf32> to vector<128xf32>
    %8 = vector.shape_cast %7 : vector<128xf32> to vector<1x128xf32>
    %9 = arith.addf %6, %8 : vector<1x128xf32>
    %c0_7 = arith.constant 0 : index
    %c0_8 = arith.constant 0 : index
    %10 = vector.load %arg3[%c0_7, %c0_8] : memref<1x128xf32, #tpu.memory_space<vmem>>, vector<1x128xf32>
    tpu.vector_store %arg3[%c0_7, %c0_8], %9 {strides = array<i32>} : memref<1x128xf32, #tpu.memory_space<vmem>>, vector<1x128xf32>,
    %c0_9 = arith.constant 0 : index
    %c0_10 = arith.constant 0 : index
    %11 = vector.load %arg4[%c0_9, %c0_10] : memref<1x128xf32, #tpu.memory_space<vmem>>, vector<1x128xf32>
    %12 = arith.mulf %5, %5 : vector<16x128xf32>
    %cst_11 = arith.constant dense<0.000000e+00> : vector<128xf32>
    %13 = vector.multi_reduction <add>, %12, %cst_11 [0] : vector<16x128xf32> to vector<128xf32>
    %14 = vector.shape_cast %13 : vector<128xf32> to vector<1x128xf32>
    %15 = arith.addf %11, %14 : vector<1x128xf32>
    %c0_12 = arith.constant 0 : index
    %c0_13 = arith.constant 0 : index
    %16 = vector.load %arg4[%c0_12, %c0_13] : memref<1x128xf32, #tpu.memory_space<vmem>>, vector<1x128xf32>
    tpu.vector_store %arg4[%c0_12, %c0_13], %15 {strides = array<i32>} : memref<1x128xf32, #tpu.memory_space<vmem>>, vector<1x128xf32>,
    return
  }
  func.func @transform_0(%arg0: i32) -> (i32, i32) {
    %c0_i32 = arith.constant 0 : i32
    %c0_i32_0 = arith.constant 0 : i32
    return %arg0, %c0_i32 : i32, i32
  }
  func.func @transform_1(%arg0: i32) -> (i32, i32) {
    %c0_i32 = arith.constant 0 : i32
    %c0_i32_0 = arith.constant 0 : i32
    %c0_i32_1 = arith.constant 0 : i32
    return %c0_i32, %c0_i32_0 : i32, i32
  }
  func.func @transform_2(%arg0: i32) -> (i32, i32) {
    %c0_i32 = arith.constant 0 : i32
    %c0_i32_0 = arith.constant 0 : i32
    %c0_i32_1 = arith.constant 0 : i32
    return %c0_i32, %c0_i32_0 : i32, i32
  }
  func.func @transform_3(%arg0: i32) -> (i32, i32) {
    %c0_i32 = arith.constant 0 : i32
    %c0_i32_0 = arith.constant 0 : i32
    %c0_i32_1 = arith.constant 0 : i32
    return %c0_i32, %c0_i32_0 : i32, i32
  }
}

</mosaic_0001>

<bundles_post_ra>
// kernel: tpu_custom_call.1
= control target key start
LH: loop header
LB: loop body
LE: loop exit
PB: predicated region body
PF: predicated region fallthrough
CT: control target
= control target key end

     0   :  { %9 = vsyncpa [#allocation3], 0  ;;  %s474_s0 = inlined_call_operand.vmem [shape: bf16[64,16], index: 0, kind: input, shape index: {}]   ;;  %s475_s1 = inlined_call_operand.vmem [shape: bf16[16,128], index: 1, kind: input, shape index: {}]   ;;  %s476_s2 = inlined_call_operand.hbm [shape: f32[1,128], index: 2, kind: output, shape index: {0}]   ;;  %s477_s3 = inlined_call_operand.hbm [shape: f32[1,128], index: 3, kind: output, shape index: {1}]  }
   0x1   :  { %10 = vsyncpa [#allocation5], 0  ;;  %s434_s12 = smov 0  }
   0x2 LB: > { %s440_s13 = sadd.s32 4294967295, %s409_s12   ;;  %p295_p0 = scmp.ge.s32.totalorder %s409_s12, 1  ;;  %s409_s12 = sphi %s434_s12, %s16_s12  }
   0x3   : > { %p133_p1 = scmp.lt.s32.totalorder %s409_s12, 5 }
   0x5   : > { %p134_p2 = pnand %p295_p0, %p133_p1 }
   0x6   : > { %s296_s14 = sshll.u32 (!%p134_p2), %s440_s13, 1  ;;  %p298_p4 = scmp.ne.s32.totalorder (!%p134_p2), %s440_s13, 0 }
   0x7   : > { %137 = sbr.rel (%p134_p2) target bundleno = 182 (0xb6), region = 28  ;;  %p153_p3 = scmp.lt.s32.totalorder (!%p134_p2), %s296_s14, 7 }
   0xc   : > { %s479_s14 = smov (!%p153_p3, %s296_s14), 7  ;;  %162 = sbr.rel (%p298_p4) target bundleno = 20 (0x14), region = 32 }
   0xd   : > { %s297_s15 = sshll.u32 %s479_s14, 2 }
   0xe   : > { %s156_s18 = scalar_lea.vmem %s474_s0, %s297_s15 }
  0x11   : > { %v411_v0 = vmov 0.0  }
  0x12   : > { %163 = vst [vmem:[#allocation2] sm:$0x1] %v411_v0 }
  0x13   : > { %164 = vst [vmem:[#allocation4] sm:$0x1] %v411_v0 }
  0x14 PF: > { %v315_v1 = vld [vmem:[%s475_s1] sm:$0xff]  ;;  %vm180_vm0 = vcmask 130048   ;;  %s412_s21 = smov [#allocation2]   ;;  %s228_s25 = sshll.u32 %s476_s2, 4  ;;  %s229_s25 = int_to_ptr.hbm [resolvable:$true] %s228_s25 }
  0x15   : > { %v314_v2 = vld [vmem:[%s156_s18] sm:$0xff]  ;;  %191 = vmatpush.bf16.msra.mxu0 %v315_v1  ;;  %s226_s22 = sshll.u32 %s412_s21, 4  ;;  %p324_p5 = scmp.eq.s32.totalorder %s440_s13, 3  ;;  %s227_s22 = int_to_ptr.vmem [resolvable:$true] %s226_s22 }
  0x16   : > { %s413_s26 = smov [#allocation4]   ;;  %s240_s30 = sshll.u32 %s477_s3, 4  ;;  %s241_s30 = int_to_ptr.hbm [resolvable:$true] %s240_s30 }
  0x17   : > { %s238_s27 = sshll.u32 %s413_s26, 4  ;;  %s239_s27 = int_to_ptr.vmem [resolvable:$true] %s238_s27 }
  0x18   : > { %307 = vmatmul.msk.bf16.vlgmr.msra.gmra.mxu0 %vm180_vm0, %v314_v2 }
  0x19   : > { %v198_v18 = vld [vmem:[#allocation2] sm:$0x1] }
  0x1a   : > { %v208_v21 = vld [vmem:[#allocation4] sm:$0x1] }
  0x95   : > { %v193_v3 = vpop.f32.mrf.mxu0 }
  0x96   : > { %v209_v5 = vmul.f32 %v193_v3, %v193_v3 }
  0x9d   : > { %v195_v4 = vpop.f32.mrf.mxu0 }
  0x9e   : > { %v199_v6 = vadd.f32 %v195_v4, %v193_v3  ;;  %v210_v7 = vmul.f32 %v195_v4, %v195_v4 }
  0xa0   : > { %v200_v8 = vrot.slane %v199_v6, 4  ;;  %v211_v9 = vadd.f32 %v210_v7, %v209_v5 }
  0xa2   : > { %v201_v10 = vadd.f32 %v200_v8, %v199_v6  ;;  %v212_v11 = vrot.slane %v211_v9, 4 }
  0xa4   : > { %v202_v12 = vrot.slane %v201_v10, 2  ;;  %v213_v13 = vadd.f32 %v212_v11, %v211_v9 }
  0xa6   : > { %v203_v14 = vadd.f32 %v202_v12, %v201_v10  ;;  %v214_v15 = vrot.slane %v213_v13, 2 }
  0xa8   : > { %v204_v16 = vrot.slane %v203_v14, 1  ;;  %v215_v17 = vadd.f32 %v214_v15, %v213_v13 }
  0xaa   : > { %v205_v19 = vadd.f32 %v204_v16, %v203_v14  ;;  %v216_v20 = vrot.slane %v215_v17, 1 }
  0xac   : > { %v206_v22 = vadd.f32 %v205_v19, %v198_v18  ;;  %v217_v23 = vadd.f32 %v216_v20, %v215_v17 }
  0xae   : > { %207 = vst [vmem:[#allocation2] sm:$0x1] %v206_v22  ;;  %v218_v24 = vadd.f32 %v217_v23, %v208_v21 }
  0xaf   : > { %317 = dma.vmem_to_hbm [thread:$0]  (%p324_p5), %s227_s22, 16, %s229_s25, [#allocation3]  }
  0xb0   : > { %219 = vst [vmem:[#allocation4] sm:$0x1] %v218_v24 }
  0xb1   : > { %319 = dma.vmem_to_hbm [thread:$0]  (%p324_p5), %s239_s27, 16, %s241_s30, [#allocation5]  }
  0xb2   : > { %400 = dma.done.wait (%p324_p5), [#allocation3], 16  }
  0xb3   : > { %402 = vsyncadd (%p324_p5), [#allocation3], 4294967280 }
  0xb4   : > { %404 = dma.done.wait (%p324_p5), [#allocation5], 16  }
  0xb5   : > { %406 = vsyncadd (%p324_p5), [#allocation5], 4294967280 }
  0xb6 PF: > { %s16_s12 = sadd.s32 1, %s409_s12  }
  0xb7   : > { %p13_p6 = scmp.ge.s32.totalorder %s16_s12, 6  }
  0xb9   :  { %15 = sbr.rel (!%p13_p6) target bundleno = 2 (0x2), region = 67 }
  0xbe   :  { %259 = vsyncpa [#allocation3], 1 }
  0xbf   :  { %261 = vsyncpa [#allocation3 + $0x1], 1 }
  0xc0   :  { %262 = vsyncpa [#allocation5], 1 }

</bundles_post_ra>
